<compile_context>
chip_gen: v7x
topology: tpu7x:2x2x1
jax: 0.10.0
libtpu: 0.0.40
codegen_flags: <defaults>
</compile_context>

<pallas_src>
import math

import jax
import jax.numpy as jnp
from jax.experimental import pallas as pl
from jax.experimental.pallas import tpu as pltpu

Z_DIM = 4            # hidden_dim_of_z
DELTA_STD = 0.05     # Deltalikelihood(hidden_dim_of_z, 0.05)
INV_DELTA = 1.0 / DELTA_STD
LOGP_CONST = -(math.log(DELTA_STD) + 0.5 * math.log(2.0 * math.pi))


def _softplus(v):
    # numerically-stable softplus with ops that lower cleanly in Mosaic
    return jnp.maximum(v, 0.0) + jnp.log(1.0 + jnp.exp(-jnp.abs(v)))


# ----------------------------------------------------------------------------
# Kernel
# ----------------------------------------------------------------------------
def _make_vaca_kernel(mu, std, nbz):
    """nbz = nb * Z_DIM : lane width of one (mu or sigma) encoder head."""
    mu = float(mu)
    inv_std = 1.0 / float(std)           # hoisted reciprocal (compile-time scalar)

    def kernel(x_ref, eps_ref, adj_ref,
               w1e_ref, b1e_ref, w2ms_ref, b2ms_ref,
               w1d_ref, b1d_ref, w2d_ref, b2d_ref,
               out_ref):
        bf16 = jnp.bfloat16

        def mm(a, b):                     # bf16 MXU matmul, f32 accumulation
            # weights / adj are already bf16 (no-op cast); every activation is
            # used by exactly one dot after head fusion, so each is cast once.
            return jnp.dot(a.astype(bf16), b.astype(bf16),
                           preferred_element_type=jnp.float32)

        adj = adj_ref[...]                # (R, R)  block-diag  I_gs (x) (A+I)
        xn = (x_ref[0] - mu) * inv_std    # (R, nb) normalized inputs
        eps = eps_ref[0]                  # (R, nb*Z) reparameterization noise

        # ---------------- GIN encoder (2 layers) ----------------
        xw = mm(xn, w1e_ref[...])                                  # (R, nb*He)
        h1 = jnp.maximum(mm(adj, xw) + b1e_ref[...], 0.0)          # (R, nb*He)
        agg1 = mm(adj, h1)                                         # (R, nb*He)
        # fused mu|sigma head: one block-diag matmul, static lane split
        heads = mm(agg1, w2ms_ref[...]) + b2ms_ref[...]            # (R, 2*nb*Z)
        mu_z = heads[:, :nbz]
        sigma_z = _softplus(heads[:, nbz:]) + 1e-6                 # Normalikelihood scale

        z = mu_z + sigma_z * eps                                   # qz_x.rsample()

        # ---------------- GIN decoder (2 layers) ----------------
        zw = mm(z, w1d_ref[...])                                   # (R, nb*Hd)
        h1d = jnp.maximum(mm(adj, zw) + b1d_ref[...], 0.0)         # (R, nb*Hd)
        aggd = mm(adj, h1d)                                        # (R, nb*Hd)
        x_hat = mm(aggd, w2d_ref[...]) + b2d_ref[...]              # (R, nb)

        # ---------------- -ELBO partial sums for this graph block -------------
        # TODO(synk): Deltalikelihood log_prob modeled as a fixed-scale (0.05)
        #             Normal (torch class body not provided in the snippet).
        r = (xn - x_hat) * INV_DELTA
        lp = jnp.sum(-0.5 * (r * r) + LOGP_CONST, keepdims=True)            # (1,1)
        kl = jnp.sum(-jnp.log(sigma_z)
                     + 0.5 * (sigma_z * sigma_z + mu_z * mu_z - 1.0),
                     keepdims=True)                                          # (1,1)

        # lane-dense (8,128) output tile: rows 0-3 carry lp, rows 4-7 carry kl
        rows = jax.lax.broadcasted_iota(jnp.int32, (8, 128), 0)
        out_ref[0] = jnp.where(rows < 4, lp, kl)

    return kernel


# ----------------------------------------------------------------------------
# Host-side (one-time) prep helpers
# ----------------------------------------------------------------------------
def build_gin_block(edge_index, dim):
    """Per-graph GIN aggregation block: B = A_in + I (eps = 0)."""
    A = jnp.zeros((dim, dim), jnp.float32)
    A = A.at[edge_index[1], edge_index[0]].set(1.0)   # aggregate sources at target
    return A + jnp.eye(dim, dtype=jnp.float32)


def _kron_eye(w, nb):
    """I_nb (x) w : block-diagonal per-graph channel weight."""
    ci, co = w.shape
    return jnp.einsum("gh,io->giho", jnp.eye(nb, dtype=w.dtype), w).reshape(
        nb * ci, nb * co)


def _detect_min_grid():
    """v7x has 2 TensorCores -> keep >=2 'parallel' grid steps there so both
    get work.  v5e/v6e have one TC -> fewer, bigger steps win."""
    try:
        kind = jax.devices()[0].device_kind.lower()
    except Exception:
        return 1
    return 2 if ("v7" in kind or "7x" in kind) else 1


def _pick_blocks(n, dim, widest, lane_target=512, row_target=256,
                 lane_cap=1024, min_grid=1):
    """Two-level graph blocking: nb graphs on the lane axis (channel-packed,
    I_nb kron weights), gs graphs on the sublane axis (node-packed,
    block-diagonal adjacency).  Priority: fill >=8 sublane rows (one f32 vreg),
    then lane width toward lane_target, then rows toward row_target, then
    fewer/bigger grid steps.  Caps keep the nb^2 kron weights tiny."""
    divs = [d for d in range(1, n + 1) if n % d == 0]
    nb_cap = max(1, lane_cap // max(1, widest))
    gs_cap = max(1, row_target // max(1, dim))
    best, best_score = (1, 1), None
    for g in divs:                               # graphs per grid step
        if n // g < min_grid:
            continue
        for nb in (d for d in range(1, g + 1) if g % d == 0):
            gs = g // nb
            if nb > nb_cap or gs > gs_cap:
                continue
            rows, lanes = gs * dim, nb * widest
            score = (min(rows, 8),               # fill one f32 vreg of sublanes
                     min(lanes, lane_target),    # then lane width (>=512 target)
                     min(rows, row_target),      # then deeper sublane blocking
                     g)                          # then fewer, bigger grid steps
            if best_score is None or score > best_score:
                best, best_score = (nb, gs), score
    return best


def _const_spec(shape):
    return pl.BlockSpec(shape, lambda i, _r=len(shape): (0,) * _r)


# ----------------------------------------------------------------------------
# Forward builder: all static prep done ONCE, returns a jitted forward(x, eps)
# ----------------------------------------------------------------------------
def make_vaca_forward(params, edge_index, n, dim, mu=0.0, std=1.0,
                      lane_target=512, row_target=256, min_grid=None):
    he = params["w1e"].shape[1]
    hd = params["w1d"].shape[1]
    hz = Z_DIM
    if min_grid is None:
        min_grid = _detect_min_grid()
    nb, gs = _pick_blocks(n, dim, max(he, hd), lane_target, row_target,
                          min_grid=min_grid)
    G = nb * gs
    # TODO(synk): ragged batches (n % (nb*gs) != 0) would need masked padding.
    n_blocks = n // G
    R = gs * dim
    N = n * dim
    bf = jnp.bfloat16

    # block-diagonal propagation: I_gs (x) (A + I)   (0/1 entries -> bf16 lossless)
    adj_blk = jnp.kron(jnp.eye(gs, dtype=jnp.float32),
                       build_gin_block(edge_index, dim)).astype(bf)       # (R, R)

    # block-diagonal (I_nb (x) W) channel weights, bf16 at the MXU; biases f32
    w1e_blk = _kron_eye(params["w1e"], nb).astype(bf)                      # (nb,    nb*He)
    w2ms_blk = jnp.concatenate(
        [_kron_eye(params["w2e"][:, :hz], nb),
         _kron_eye(params["w2e"][:, hz:], nb)], axis=1).astype(bf)         # (nb*He, 2*nb*Z)
    w1d_blk = _kron_eye(params["w1d"], nb).astype(bf)                      # (nb*Z,  nb*Hd)
    w2d_blk = _kron_eye(params["w2d"], nb).astype(bf)                      # (nb*Hd, nb)
    b1e_t = jnp.tile(params["b1e"], (1, nb))
    b2ms_t = jnp.concatenate([jnp.tile(params["b2e"][:, :hz], (1, nb)),
                              jnp.tile(params["b2e"][:, hz:], (1, nb))], axis=1)
    b1d_t = jnp.tile(params["b1d"], (1, nb))
    b2d_t = jnp.tile(params["b2d"], (1, nb))

    call = pl.pallas_call(
        _make_vaca_kernel(mu, std, nb * hz),
        out_shape=jax.ShapeDtypeStruct((n_blocks, 8, 128), jnp.float32),
        grid=(n_blocks,),
        in_specs=[pl.BlockSpec((1, R, nb), lambda i: (i, 0, 0)),           # x block
                  pl.BlockSpec((1, R, nb * hz), lambda i: (i, 0, 0)),      # eps block
                  _const_spec(adj_blk.shape),
                  _const_spec(w1e_blk.shape), _const_spec(b1e_t.shape),
                  _const_spec(w2ms_blk.shape), _const_spec(b2ms_t.shape),
                  _const_spec(w1d_blk.shape), _const_spec(b1d_t.shape),
                  _const_spec(w2d_blk.shape), _const_spec(b2d_t.shape)],
        out_specs=pl.BlockSpec((1, 8, 128), lambda i: (i, 0, 0)),
        compiler_params=pltpu.CompilerParams(
            dimension_semantics=("parallel",)),   # graph blocks shard across v7x's 2 TCs
    )

    def forward(x, eps):
        # data-dependent relayout: graph g -> (block, row-group, lane-group)
        xb = (x.astype(jnp.float32)
                .reshape(n_blocks, gs, nb, dim)
                .transpose(0, 1, 3, 2)
                .reshape(n_blocks, R, nb))
        epsb = (eps.astype(jnp.float32)
                  .reshape(n_blocks, gs, nb, dim, hz)
                  .transpose(0, 1, 3, 2, 4)
                  .reshape(n_blocks, R, nb * hz))
        out = call(xb, epsb, adj_blk,
                   w1e_blk, b1e_t, w2ms_blk, b2ms_t,
                   w1d_blk, b1d_t, w2d_blk, b2d_t)
        logp = jnp.sum(out[:, 0, 0]) / N     # mean over all N nodes
        kl = jnp.sum(out[:, 4, 0]) / N
        return -(logp - kl)

    return jax.jit(forward)


# ----------------------------------------------------------------------------
# Pure-JAX reference (dense P = I_n (x) (A+I)) for validation
# ----------------------------------------------------------------------------
def reference_forward(x, params, edge_index, eps, mu=0.0, std=1.0):
    n, dim = x.shape
    B = build_gin_block(edge_index, dim)
    P = jnp.kron(jnp.eye(n, dtype=jnp.float32), B)    # dense P only in the reference
    xc = ((x.reshape(n * dim, 1) - mu) / std).astype(jnp.float32)

    def mm(a, b):
        return jnp.dot(a.astype(jnp.bfloat16), b.astype(jnp.bfloat16),
                       preferred_element_type=jnp.float32)

    xw = mm(xc, params["w1e"])
    h1 = jnp.maximum(mm(P, xw) + params["b1e"], 0.0)
    agg1 = mm(P, h1)
    mu_z = mm(agg1, params["w2e"][:, :Z_DIM]) + params["b2e"][:, :Z_DIM]
    raw = mm(agg1, params["w2e"][:, Z_DIM:]) + params["b2e"][:, Z_DIM:]
    sigma_z = _softplus(raw) + 1e-6
    z = mu_z + sigma_z * eps
    h1d = jnp.maximum(mm(P, mm(z, params["w1d"])) + params["b1d"], 0.0)
    aggd = mm(P, h1d)
    x_hat = mm(aggd, params["w2d"]) + params["b2d"]
    logp_elem = -0.5 * ((xc - x_hat) * INV_DELTA) ** 2 + LOGP_CONST
    logp = jnp.mean(jnp.sum(logp_elem, axis=1))
    kl_elem = -jnp.log(sigma_z) + 0.5 * (sigma_z ** 2 + mu_z ** 2 - 1.0)
    kl = jnp.mean(jnp.sum(kl_elem, axis=1))
    return -(logp - kl)


if __name__ == "__main__":
    key = jax.random.PRNGKey(0)
    n, dim = 16, 4                     # batch of 16 graphs, 4 nodes each -> N = 64
    hz, he, hd = Z_DIM, 16, 16         # hidden_dim_of_z, enc/dec hidden channels

    # small DAG per graph: 0->1, 0->2, 1->3, 2->3
    edge_index = jnp.array([[0, 0, 1, 2],
                            [1, 2, 3, 3]], dtype=jnp.int32)

    ks = jax.random.split(key, 10)

    def init(k, shape, scale=0.3):
        return (scale * jax.random.normal(k, shape)).astype(jnp.float32)

    # TODO(synk): PNA / GAT variants and the exact torch_geometric GIN MLP stack
    #             are not reproducible from the snippet; a 2-layer GINConv
    #             (single Linear per conv, ReLU between layers) is used.
    params = {
        "w1e": init(ks[0], (1, he)),        # encoder conv1: in=1  -> 16
        "b1e": init(ks[1], (1, he), 0.05),
        "w2e": init(ks[2], (he, 2 * hz)),   # encoder conv2: 16 -> params_size=2*z
        "b2e": init(ks[3], (1, 2 * hz), 0.05),
        "w1d": init(ks[4], (hz, hd)),       # decoder conv1: z=4 -> 16
        "b1d": init(ks[5], (1, hd), 0.05),
        "w2d": init(ks[6], (hd, 1)),        # decoder conv2: 16 -> 1
        "b2d": init(ks[7], (1, 1), 0.05),
    }

    x = jax.random.normal(ks[8], (n, dim), jnp.float32)
    # TODO(synk): rsample noise is supplied externally for determinism instead
    #             of drawing it with the in-kernel PRNG.
    eps = jax.random.normal(ks[9], (n * dim, hz), jnp.float32)

    forward = make_vaca_forward(params, edge_index, n, dim)   # one-time prep
    neg_elbo = jax.block_until_ready(forward(x, eps))
    ref = reference_forward(x, params, edge_index, eps)
    assert jnp.isfinite(neg_elbo)
    assert jnp.allclose(neg_elbo, ref, rtol=1e-2, atol=1e-2), (neg_elbo, ref)
    print("KERNEL_OK")
</pallas_src>

<mosaic_0001>
module attributes {stable_mosaic.version = 11 : i64} {
  func.func @kernel(%arg0: i32, %arg1: memref<1x8x8xf32, #tpu.memory_space<vmem>>, %arg2: memref<1x8x32xf32, #tpu.memory_space<vmem>>, %arg3: memref<8x8xbf16, #tpu.memory_space<vmem>>, %arg4: memref<8x128xbf16, #tpu.memory_space<vmem>>, %arg5: memref<1x128xf32, #tpu.memory_space<vmem>>, %arg6: memref<128x64xbf16, #tpu.memory_space<vmem>>, %arg7: memref<1x64xf32, #tpu.memory_space<vmem>>, %arg8: memref<32x128xbf16, #tpu.memory_space<vmem>>, %arg9: memref<1x128xf32, #tpu.memory_space<vmem>>, %arg10: memref<128x8xbf16, #tpu.memory_space<vmem>>, %arg11: memref<1x8xf32, #tpu.memory_space<vmem>>, %arg12: memref<1x8x128xf32, #tpu.memory_space<vmem>>) attributes {dimension_semantics = [#tpu.dimension_semantics<parallel>], iteration_bounds = array<i64: 1>, scalar_prefetch = 0 : i64, scratch_operands = 0 : i64, tpu.core_type = #tpu.core_type<tc>, window_params = [{transform_indices = @transform_0, window_bounds = array<i64: 1, 8, 8>}, {transform_indices = @transform_1, window_bounds = array<i64: 1, 8, 32>}, {pipeline_mode = #tpu.pipeline_mode<synchronous>, transform_indices = @transform_2, window_bounds = array<i64: 8, 8>}, {pipeline_mode = #tpu.pipeline_mode<synchronous>, transform_indices = @transform_3, window_bounds = array<i64: 8, 128>}, {pipeline_mode = #tpu.pipeline_mode<synchronous>, transform_indices = @transform_4, window_bounds = array<i64: 1, 128>}, {pipeline_mode = #tpu.pipeline_mode<synchronous>, transform_indices = @transform_5, window_bounds = array<i64: 128, 64>}, {pipeline_mode = #tpu.pipeline_mode<synchronous>, transform_indices = @transform_6, window_bounds = array<i64: 1, 64>}, {pipeline_mode = #tpu.pipeline_mode<synchronous>, transform_indices = @transform_7, window_bounds = array<i64: 32, 128>}, {pipeline_mode = #tpu.pipeline_mode<synchronous>, transform_indices = @transform_8, window_bounds = array<i64: 1, 128>}, {pipeline_mode = #tpu.pipeline_mode<synchronous>, transform_indices = @transform_9, window_bounds = array<i64: 128, 8>}, {pipeline_mode = #tpu.pipeline_mode<synchronous>, transform_indices = @transform_10, window_bounds = array<i64: 1, 8>}, {transform_indices = @transform_11, window_bounds = array<i64: 1, 8, 128>}]} {
    %c0 = arith.constant 0 : index
    %c0_0 = arith.constant 0 : index
    %0 = vector.load %arg3[%c0, %c0_0] : memref<8x8xbf16, #tpu.memory_space<vmem>>, vector<8x8xbf16>
    %c0_1 = arith.constant 0 : index
    %c0_2 = arith.constant 0 : index
    %c0_3 = arith.constant 0 : index
    %1 = vector.load %arg1[%c0_1, %c0_2, %c0_3] : memref<1x8x8xf32, #tpu.memory_space<vmem>>, vector<1x8x8xf32>
    %2 = vector.shape_cast %1 : vector<1x8x8xf32> to vector<8x8xf32>
    %cst = arith.constant 0.000000e+00 : f32
    %3 = vector.broadcast %cst : f32 to vector<8x8xf32>
    %4 = arith.subf %2, %3 : vector<8x8xf32>
    %cst_4 = arith.constant 1.000000e+00 : f32
    %5 = vector.broadcast %cst_4 : f32 to vector<8x8xf32>
    %6 = arith.mulf %4, %5 : vector<8x8xf32>
    %c0_5 = arith.constant 0 : index
    %c0_6 = arith.constant 0 : index
    %c0_7 = arith.constant 0 : index
    %7 = vector.load %arg2[%c0_5, %c0_6, %c0_7] : memref<1x8x32xf32, #tpu.memory_space<vmem>>, vector<1x8x32xf32>
    %8 = vector.shape_cast %7 : vector<1x8x32xf32> to vector<8x32xf32>
    %c0_8 = arith.constant 0 : index
    %c0_9 = arith.constant 0 : index
    %9 = vector.load %arg4[%c0_8, %c0_9] : memref<8x128xbf16, #tpu.memory_space<vmem>>, vector<8x128xbf16>
    %10 = arith.truncf %6 : vector<8x8xf32> to vector<8x8xbf16>
    %cst_10 = arith.constant dense<0.000000e+00> : vector<8x128xf32>
    %11 = tpu.matmul %10, %9, %cst_10 {dimension_numbers = #tpu.dot_dimension_numbers<[1], [0], [0], [1], [0, 0, 1, 1], [], []>} : vector<8x8xbf16>, vector<8x128xbf16>, vector<8x128xf32> -> vector<8x128xf32>
    %12 = arith.truncf %11 : vector<8x128xf32> to vector<8x128xbf16>
    %cst_11 = arith.constant dense<0.000000e+00> : vector<8x128xf32>
    %13 = tpu.matmul %0, %12, %cst_11 {dimension_numbers = #tpu.dot_dimension_numbers<[1], [0], [0], [1], [0, 0, 1, 1], [], []>} : vector<8x8xbf16>, vector<8x128xbf16>, vector<8x128xf32> -> vector<8x128xf32>
    %c0_12 = arith.constant 0 : index
    %c0_13 = arith.constant 0 : index
    %14 = vector.load %arg5[%c0_12, %c0_13] : memref<1x128xf32, #tpu.memory_space<vmem>>, vector<1x128xf32>
    %15 = vector.broadcast %14 : vector<1x128xf32> to vector<8x128xf32>
    %16 = arith.addf %13, %15 : vector<8x128xf32>
    %cst_14 = arith.constant 0.000000e+00 : f32
    %17 = vector.broadcast %cst_14 : f32 to vector<8x128xf32>
    %18 = arith.maximumf %16, %17 : vector<8x128xf32>
    %19 = arith.truncf %18 : vector<8x128xf32> to vector<8x128xbf16>
    %cst_15 = arith.constant dense<0.000000e+00> : vector<8x128xf32>
    %20 = tpu.matmul %0, %19, %cst_15 {dimension_numbers = #tpu.dot_dimension_numbers<[1], [0], [0], [1], [0, 0, 1, 1], [], []>} : vector<8x8xbf16>, vector<8x128xbf16>, vector<8x128xf32> -> vector<8x128xf32>
    %c0_16 = arith.constant 0 : index
    %c0_17 = arith.constant 0 : index
    %21 = vector.load %arg6[%c0_16, %c0_17] : memref<128x64xbf16, #tpu.memory_space<vmem>>, vector<128x64xbf16>
    %22 = arith.truncf %20 : vector<8x128xf32> to vector<8x128xbf16>
    %cst_18 = arith.constant dense<0.000000e+00> : vector<8x64xf32>
    %23 = tpu.matmul %22, %21, %cst_18 {dimension_numbers = #tpu.dot_dimension_numbers<[1], [0], [0], [1], [0, 0, 1, 1], [], []>} : vector<8x128xbf16>, vector<128x64xbf16>, vector<8x64xf32> -> vector<8x64xf32>
    %c0_19 = arith.constant 0 : index
    %c0_20 = arith.constant 0 : index
    %24 = vector.load %arg7[%c0_19, %c0_20] : memref<1x64xf32, #tpu.memory_space<vmem>>, vector<1x64xf32>
    %25 = vector.broadcast %24 : vector<1x64xf32> to vector<8x64xf32>
    %26 = arith.addf %23, %25 : vector<8x64xf32>
    %27 = vector.extract_strided_slice %26 {offsets = [0, 0], sizes = [8, 32], strides = [1, 1]} : vector<8x64xf32> to vector<8x32xf32>
    %28 = vector.extract_strided_slice %26 {offsets = [0, 32], sizes = [8, 32], strides = [1, 1]} : vector<8x64xf32> to vector<8x32xf32>
    %cst_21 = arith.constant 0.000000e+00 : f32
    %29 = vector.broadcast %cst_21 : f32 to vector<8x32xf32>
    %30 = arith.maximumf %28, %29 : vector<8x32xf32>
    %31 = math.absf %28 : vector<8x32xf32>
    %cst_22 = arith.constant 0.000000e+00 : f32
    %32 = vector.broadcast %cst_22 : f32 to vector<8x32xf32>
    %33 = arith.subf %32, %31 : vector<8x32xf32>
    %34 = math.exp %33 : vector<8x32xf32>
    %cst_23 = arith.constant 1.000000e+00 : f32
    %35 = vector.broadcast %cst_23 : f32 to vector<8x32xf32>
    %36 = arith.addf %35, %34 : vector<8x32xf32>
    %37 = math.log %36 : vector<8x32xf32>
    %38 = arith.addf %30, %37 : vector<8x32xf32>
    %cst_24 = arith.constant 9.99999997E-7 : f32
    %39 = vector.broadcast %cst_24 : f32 to vector<8x32xf32>
    %40 = arith.addf %38, %39 : vector<8x32xf32>
    %41 = arith.mulf %40, %8 : vector<8x32xf32>
    %42 = arith.addf %27, %41 : vector<8x32xf32>
    %c0_25 = arith.constant 0 : index
    %c0_26 = arith.constant 0 : index
    %43 = vector.load %arg8[%c0_25, %c0_26] : memref<32x128xbf16, #tpu.memory_space<vmem>>, vector<32x128xbf16>
    %44 = arith.truncf %42 : vector<8x32xf32> to vector<8x32xbf16>
    %cst_27 = arith.constant dense<0.000000e+00> : vector<8x128xf32>
    %45 = tpu.matmul %44, %43, %cst_27 {dimension_numbers = #tpu.dot_dimension_numbers<[1], [0], [0], [1], [0, 0, 1, 1], [], []>} : vector<8x32xbf16>, vector<32x128xbf16>, vector<8x128xf32> -> vector<8x128xf32>
    %46 = arith.truncf %45 : vector<8x128xf32> to vector<8x128xbf16>
    %cst_28 = arith.constant dense<0.000000e+00> : vector<8x128xf32>
    %47 = tpu.matmul %0, %46, %cst_28 {dimension_numbers = #tpu.dot_dimension_numbers<[1], [0], [0], [1], [0, 0, 1, 1], [], []>} : vector<8x8xbf16>, vector<8x128xbf16>, vector<8x128xf32> -> vector<8x128xf32>
    %c0_29 = arith.constant 0 : index
    %c0_30 = arith.constant 0 : index
    %48 = vector.load %arg9[%c0_29, %c0_30] : memref<1x128xf32, #tpu.memory_space<vmem>>, vector<1x128xf32>
    %49 = vector.broadcast %48 : vector<1x128xf32> to vector<8x128xf32>
    %50 = arith.addf %47, %49 : vector<8x128xf32>
    %cst_31 = arith.constant 0.000000e+00 : f32
    %51 = vector.broadcast %cst_31 : f32 to vector<8x128xf32>
    %52 = arith.maximumf %50, %51 : vector<8x128xf32>
    %53 = arith.truncf %52 : vector<8x128xf32> to vector<8x128xbf16>
    %cst_32 = arith.constant dense<0.000000e+00> : vector<8x128xf32>
    %54 = tpu.matmul %0, %53, %cst_32 {dimension_numbers = #tpu.dot_dimension_numbers<[1], [0], [0], [1], [0, 0, 1, 1], [], []>} : vector<8x8xbf16>, vector<8x128xbf16>, vector<8x128xf32> -> vector<8x128xf32>
    %c0_33 = arith.constant 0 : index
    %c0_34 = arith.constant 0 : index
    %55 = vector.load %arg10[%c0_33, %c0_34] : memref<128x8xbf16, #tpu.memory_space<vmem>>, vector<128x8xbf16>
    %56 = arith.truncf %54 : vector<8x128xf32> to vector<8x128xbf16>
    %cst_35 = arith.constant dense<0.000000e+00> : vector<8x8xf32>
    %57 = tpu.matmul %56, %55, %cst_35 {dimension_numbers = #tpu.dot_dimension_numbers<[1], [0], [0], [1], [0, 0, 1, 1], [], []>} : vector<8x128xbf16>, vector<128x8xbf16>, vector<8x8xf32> -> vector<8x8xf32>
    %c0_36 = arith.constant 0 : index
    %c0_37 = arith.constant 0 : index
    %58 = vector.load %arg11[%c0_36, %c0_37] : memref<1x8xf32, #tpu.memory_space<vmem>>, vector<1x8xf32>
    %59 = vector.broadcast %58 : vector<1x8xf32> to vector<8x8xf32>
    %60 = arith.addf %57, %59 : vector<8x8xf32>
    %61 = arith.subf %6, %60 : vector<8x8xf32>
    %cst_38 = arith.constant 2.000000e+01 : f32
    %62 = vector.broadcast %cst_38 : f32 to vector<8x8xf32>
    %63 = arith.mulf %61, %62 : vector<8x8xf32>
    %64 = arith.mulf %63, %63 : vector<8x8xf32>
    %cst_39 = arith.constant -5.000000e-01 : f32
    %65 = vector.broadcast %cst_39 : f32 to vector<8x8xf32>
    %66 = arith.mulf %65, %64 : vector<8x8xf32>
    %cst_40 = arith.constant 2.07679367 : f32
    %67 = vector.broadcast %cst_40 : f32 to vector<8x8xf32>
    %68 = arith.addf %66, %67 : vector<8x8xf32>
    %69 = vector.shape_cast %68 : vector<8x8xf32> to vector<1x8x8xf32>
    %cst_41 = arith.constant dense<0.000000e+00> : vector<1xf32>
    %70 = vector.multi_reduction <add>, %69, %cst_41 [1, 2] : vector<1x8x8xf32> to vector<1xf32>
    %71 = vector.shape_cast %70 : vector<1xf32> to vector<1x1x1xf32>
    %72 = vector.extract %71[0, 0, 0] : f32 from vector<1x1x1xf32>
    %73 = vector.broadcast %72 : f32 to vector<1x1xf32>
    %74 = math.log %40 : vector<8x32xf32>
    %cst_42 = arith.constant 0.000000e+00 : f32
    %75 = vector.broadcast %cst_42 : f32 to vector<8x32xf32>
    %76 = arith.subf %75, %74 : vector<8x32xf32>
    %77 = arith.mulf %40, %40 : vector<8x32xf32>
    %78 = arith.mulf %27, %27 : vector<8x32xf32>
    %79 = arith.addf %77, %78 : vector<8x32xf32>
    %cst_43 = arith.constant 1.000000e+00 : f32
    %80 = vector.broadcast %cst_43 : f32 to vector<8x32xf32>
    %81 = arith.subf %79, %80 : vector<8x32xf32>
    %cst_44 = arith.constant 5.000000e-01 : f32
    %82 = vector.broadcast %cst_44 : f32 to vector<8x32xf32>
    %83 = arith.mulf %82, %81 : vector<8x32xf32>
    %84 = arith.addf %76, %83 : vector<8x32xf32>
    %85 = vector.shape_cast %84 : vector<8x32xf32> to vector<1x8x32xf32>
    %cst_45 = arith.constant dense<0.000000e+00> : vector<1xf32>
    %86 = vector.multi_reduction <add>, %85, %cst_45 [1, 2] : vector<1x8x32xf32> to vector<1xf32>
    %87 = vector.shape_cast %86 : vector<1xf32> to vector<1x1x1xf32>
    %88 = vector.extract %87[0, 0, 0] : f32 from vector<1x1x1xf32>
    %89 = vector.broadcast %88 : f32 to vector<1x1xf32>
    %90 = tpu.iota {dimensions = array<i32: 0>} : vector<8x128xi32>
    %c4_i32 = arith.constant 4 : i32
    %91 = vector.broadcast %c4_i32 : i32 to vector<8x128xi32>
    %92 = arith.cmpi slt, %90, %91 : vector<8x128xi32>
    %93 = vector.shape_cast %73 : vector<1x1xf32> to vector<1x1xf32>
    %94 = vector.broadcast %93 : vector<1x1xf32> to vector<8x128xf32>
    %95 = vector.shape_cast %89 : vector<1x1xf32> to vector<1x1xf32>
    %96 = vector.broadcast %95 : vector<1x1xf32> to vector<8x128xf32>
    %97 = arith.select %92, %94, %96 : vector<8x128xi1>, vector<8x128xf32>
    %c0_46 = arith.constant 0 : index
    %c0_47 = arith.constant 0 : index
    %c0_48 = arith.constant 0 : index
    %98 = vector.load %arg12[%c0_46, %c0_47, %c0_48] : memref<1x8x128xf32, #tpu.memory_space<vmem>>, vector<1x8x128xf32>
    %99 = vector.shape_cast %98 : vector<1x8x128xf32> to vector<8x128xf32>
    %100 = vector.shape_cast %97 : vector<8x128xf32> to vector<1x8x128xf32>
    tpu.vector_store %arg12[%c0_46, %c0_47, %c0_48], %100 {strides = array<i32>} : memref<1x8x128xf32, #tpu.memory_space<vmem>>, vector<1x8x128xf32>,
    return
  }
  func.func @transform_0(%arg0: i32) -> (i32, i32, i32) {
    %c0_i32 = arith.constant 0 : i32
    %c0_i32_0 = arith.constant 0 : i32
    %c0_i32_1 = arith.constant 0 : i32
    return %arg0, %c0_i32, %c0_i32_0 : i32, i32, i32
  }
  func.func @transform_1(%arg0: i32) -> (i32, i32, i32) {
    %c0_i32 = arith.constant 0 : i32
    %c0_i32_0 = arith.constant 0 : i32
    %c0_i32_1 = arith.constant 0 : i32
    return %arg0, %c0_i32, %c0_i32_0 : i32, i32, i32
  }
  func.func @transform_2(%arg0: i32) -> (i32, i32) {
    %c0_i32 = arith.constant 0 : i32
    %c0_i32_0 = arith.constant 0 : i32
    %c0_i32_1 = arith.constant 0 : i32
    return %c0_i32, %c0_i32_0 : i32, i32
  }
  func.func @transform_3(%arg0: i32) -> (i32, i32) {
    %c0_i32 = arith.constant 0 : i32
    %c0_i32_0 = arith.constant 0 : i32
    %c0_i32_1 = arith.constant 0 : i32
    return %c0_i32, %c0_i32_0 : i32, i32
  }
  func.func @transform_4(%arg0: i32) -> (i32, i32) {
    %c0_i32 = arith.constant 0 : i32
    %c0_i32_0 = arith.constant 0 : i32
    %c0_i32_1 = arith.constant 0 : i32
    return %c0_i32, %c0_i32_0 : i32, i32
  }
  func.func @transform_5(%arg0: i32) -> (i32, i32) {
    %c0_i32 = arith.constant 0 : i32
    %c0_i32_0 = arith.constant 0 : i32
    %c0_i32_1 = arith.constant 0 : i32
    return %c0_i32, %c0_i32_0 : i32, i32
  }
  func.func @transform_6(%arg0: i32) -> (i32, i32) {
    %c0_i32 = arith.constant 0 : i32
    %c0_i32_0 = arith.constant 0 : i32
    %c0_i32_1 = arith.constant 0 : i32
    return %c0_i32, %c0_i32_0 : i32, i32
  }
  func.func @transform_7(%arg0: i32) -> (i32, i32) {
    %c0_i32 = arith.constant 0 : i32
    %c0_i32_0 = arith.constant 0 : i32
    %c0_i32_1 = arith.constant 0 : i32
    return %c0_i32, %c0_i32_0 : i32, i32
  }
  func.func @transform_8(%arg0: i32) -> (i32, i32) {
    %c0_i32 = arith.constant 0 : i32
    %c0_i32_0 = arith.constant 0 : i32
    %c0_i32_1 = arith.constant 0 : i32
    return %c0_i32, %c0_i32_0 : i32, i32
  }
  func.func @transform_9(%arg0: i32) -> (i32, i32) {
    %c0_i32 = arith.constant 0 : i32
    %c0_i32_0 = arith.constant 0 : i32
    %c0_i32_1 = arith.constant 0 : i32
    return %c0_i32, %c0_i32_0 : i32, i32
  }
  func.func @transform_10(%arg0: i32) -> (i32, i32) {
    %c0_i32 = arith.constant 0 : i32
    %c0_i32_0 = arith.constant 0 : i32
    %c0_i32_1 = arith.constant 0 : i32
    return %c0_i32, %c0_i32_0 : i32, i32
  }
  func.func @transform_11(%arg0: i32) -> (i32, i32, i32) {
    %c0_i32 = arith.constant 0 : i32
    %c0_i32_0 = arith.constant 0 : i32
    %c0_i32_1 = arith.constant 0 : i32
    return %arg0, %c0_i32, %c0_i32_0 : i32, i32, i32
  }
}

</mosaic_0001>

<bundles_post_ra>
// kernel: forward.1
= control target key start
LH: loop header
LB: loop body
LE: loop exit
PB: predicated region body
PF: predicated region fallthrough
CT: control target
= control target key end

     0   :  { %vm48_vm0 = vcmask 1043456   ;;  %v815_v0 = vmov 0.0   ;;  %vm816_vm1 = vmmov 0   ;;  %vm44_vm2 = vcmask 64512   ;;  %s817_s20 = smov 32   ;;  %s818_s22 = smov 96   ;;  %s1021_s3 = inlined_call_operand.vmem [shape: bf16[8,128], index: 3, kind: input, shape index: {}]   ;;  %s1022_s0 = inlined_call_operand.vmem [shape: f32[1,8,8], index: 0, kind: input, shape index: {}]   ;;  %s1023_s2 = inlined_call_operand.vmem [shape: bf16[8,8], index: 2, kind: input, shape index: {}]   ;;  %s1024_s5 = inlined_call_operand.vmem [shape: bf16[128,64], index: 5, kind: input, shape index: {}]   ;;  %s1025_s4 = inlined_call_operand.vmem [shape: f32[1,128], index: 4, kind: input, shape index: {}]   ;;  %s1026_s1 = inlined_call_operand.vmem [shape: f32[1,8,32], index: 1, kind: input, shape index: {}]   ;;  %s1027_s6 = inlined_call_operand.vmem [shape: f32[1,64], index: 6, kind: input, shape index: {}]   ;;  %s1028_s7 = inlined_call_operand.vmem [shape: bf16[32,128], index: 7, kind: input, shape index: {}]   ;;  %s1029_s9 = inlined_call_operand.vmem [shape: bf16[128,8], index: 9, kind: input, shape index: {}]   ;;  %s1030_s8 = inlined_call_operand.vmem [shape: f32[1,128], index: 8, kind: input, shape index: {}]   ;;  %s1031_s10 = inlined_call_operand.vmem [shape: f32[1,8], index: 10, kind: input, shape index: {}]   ;;  %s1032_s11 = inlined_call_operand.vmem [shape: f32[1,8,128], index: 11, kind: output, shape index: {}]  }
   0x1   :  { %705 = vmatprep.subr.bf16.mxu1 %v815_v0  ;;  %v42_v1 = vld [vmem:[%s1021_s3] sm:$0xf]  ;;  %707 = vmatprep.mubr.msk.bf16.mxu1 %vm816_vm1, %v815_v0  ;;  %v792_v13 = vld [vmem:[%s1024_s5 + $0x8] sm:$0xff]   ;;  %v793_v14 = vld [vmem:[%s1024_s5 + $0x10] sm:$0xff]   ;;  %vm340_vm3 = vcmask 261120  }
   0x2   :  { %v888_v2 = vld [vmem:[%s1022_s0] sm:$0xff]  ;;  %v50_v3 = vsel %vm48_vm0, %v42_v1, 0  ;;  %717 = vmatprep.subr.bf16.mxu0 %v815_v0  ;;  %719 = vmatprep.mubr.msk.bf16.mxu0 %vm816_vm1, %v815_v0  ;;  %v794_v15 = vld [vmem:[%s1024_s5 + $0x18] sm:$0xff]   ;;  %v796_v17 = vld [vmem:[%s1024_s5 + $0x28] sm:$0xff]  }
   0x3   :  { %v43_v4 = vpack.c.bf16 %v888_v2, %v888_v2  ;;  %706 = vmatpush3.bf16.msra.mxu1 %v50_v3  ;;  %v904_v11 = vld [vmem:[%s1023_s2] sm:$0xf]  ;;  %v797_v18 = vld [vmem:[%s1024_s5 + $0x30] sm:$0xff]   ;;  %v798_v28 = vld [vmem:[%s1024_s5 + $0x38] sm:$0xff]  }
   0x4   :  { %711 = vmatprep.subr.bf16.mxu1 %v815_v0  ;;  %v791_v12 = vld [vmem:[%s1024_s5] sm:$0xff]   ;;  %v800_v48 = vld [vmem:[%s1028_s7 + $0x8] sm:$0xff]  }
   0x5   :  { %v795_v16 = vld [vmem:[%s1024_s5 + $0x20] sm:$0xff]  }
   0x6   :  { %708 = vmatmul.mubr.msk.bf16.vlgmr.msra.gmra.mrb[0].mxu1 %vm44_vm2, %v43_v4  ;;  %v646_v19 = vld [vmem:[%s1025_s4] ss:$0 sm:$0xff] }
   0x7   :  { %713 = vmatprep.mubr.msk.bf16.mxu1 %vm816_vm1, %v815_v0  ;;  %v41_v29 = vld [vmem:[%s1026_s1] sm:$0xff] }
   0x8   :  { %314 = vrot.lane.b32.xlu0 %v41_v29, %s817_s20  ;;  %v649_v35 = vld [vmem:[%s1027_s6] ss:$0 sm:$0xff]  ;;  %v807_v29 = vld [vmem:[%s1029_s9 + $0x30] sm:$0xff]  }
   0x9   :  { %v799_v39 = vld [vmem:[%s1028_s7] sm:$0xff]  }
  0x7a   :  { %v315_v53 = vpop.permute.xlu0 %314 }
  0xd9   :  { %v86_v5 = vpop.f32.mrb[0].mxu1 }
  0xda   :  { %v92_v6 = vpack.c.bf16 %v86_v5, %v86_v5  ;;  %v709_v7 = vpop.f32.mrb[1].mxu1 }
  0xdb   :  { %v89_v8 = vpop.f32.mrb[2].mxu1 }
  0xdc   :  { %v104_v9 = vsel %vm48_vm0, %v92_v6, 0  ;;  %v710_v10 = vpop.f32.mrb[3].mxu1 }
  0xdd   :  { %712 = vmatpush3.bf16.msra.mxu1 %v104_v9 }
  0xde   :  { %723 = vmatprep.subr.bf16.mxu1 %v815_v0 }
  0xe0   :  { %714 = vmatmul.mubr.msk.bf16.vlgmr.msra.gmra.mrb[4].mxu1 %vm44_vm2, %v904_v11 }
  0xe1   :  { %739 = vmatprep.mubr.msk.bf16.mxu1 %vm816_vm1, %v815_v0  ;;  %724 = vmatpush3.bf16.msra.mxu1 %v791_v12 }
  0xe2   :  { %725 = vmatprep.subr.bf16.mxu1 %v815_v0 }
  0xe5   :  { %726 = vmatpush3.bf16.msra.mxu1 %v792_v13 }
  0xe6   :  { %727 = vmatprep.subr.bf16.mxu1 %v815_v0 }
  0xe9   :  { %728 = vmatpush3.bf16.msra.mxu1 %v793_v14 }
  0xea   :  { %729 = vmatprep.subr.bf16.mxu1 %v815_v0 }
  0xed   :  { %730 = vmatpush3.bf16.msra.mxu1 %v794_v15  ;;  %v661_v15 = vld [vmem:[%s1030_s8] ss:$0 sm:$0xff] }
  0xee   :  { %731 = vmatprep.subr.bf16.mxu1 %v815_v0 }
  0xf1   :  { %732 = vmatpush3.bf16.msra.mxu1 %v795_v16 }
  0xf2   :  { %733 = vmatprep.subr.bf16.mxu1 %v815_v0 }
  0xf5   :  { %734 = vmatpush3.bf16.msra.mxu1 %v796_v17 }
  0xf6   :  { %735 = vmatprep.subr.bf16.mxu1 %v815_v0 }
  0xf9   :  { %736 = vmatpush3.bf16.msra.mxu1 %v797_v18 }
  0xfa   :  { %737 = vmatprep.subr.bf16.mxu1 %v815_v0 }
  0xfd   :  { %738 = vmatpush3.bf16.msra.mxu1 %v798_v28  ;;  %v806_v28 = vld [vmem:[%s1029_s9 + $0x28] sm:$0xff]  }
  0xfe   :  { %743 = vmatprep.subr.bf16.mxu1 %v815_v0 }
 0x1b3   :  { %v140_v20 = vpop.f32.mrb[4].mxu1 }
 0x1b4   :  { %v141_v21 = vadd.f32 %v646_v19, %v140_v20  ;;  %v715_v22 = vpop.f32.mrb[5].mxu1 }
 0x1b5   :  { %v143_v23 = vpop.f32.mrb[6].mxu1 }
 0x1b6   :  { %v146_v24 = vmax.f32 %v141_v21, 0.0  ;;  %v716_v25 = vpop.f32.mrb[7].mxu1 }
 0x1b7   :  { %v802_v25 = vld [vmem:[%s1029_s9 + $0x8] sm:$0xff]  }
 0x1b8   :  { %v147_v26 = vpack.c.bf16 %v146_v24, %v146_v24  ;;  %v801_v24 = vld [vmem:[%s1029_s9] sm:$0xff]  }
 0x1ba   :  { %v149_v27 = vsel %vm48_vm0, %v147_v26, 0  ;;  %v803_v26 = vld [vmem:[%s1029_s9 + $0x10] sm:$0xff]  }
 0x1bb   :  { %718 = vmatpush3.bf16.msra.mxu0 %v149_v27  ;;  %v805_v27 = vld [vmem:[%s1029_s9 + $0x20] sm:$0xff]  }
 0x1bc   :  { %751 = vmatprep.subr.bf16.mxu0 %v815_v0 }
 0x1be   :  { %720 = vmatmul.mubr.msk.bf16.vlgmr.msra.gmra.mrb[0].mxu0 %vm44_vm2, %v904_v11 }
 0x1bf   :  { %753 = vmatprep.mubr.msk.bf16.mxu0 %vm816_vm1, %v815_v0 }
 0x291   :  { %v185_v30 = vpop.f32.mrb[0].mxu0 }
 0x292   :  { %v207_v31 = vpack.c.bf16 %v185_v30, %v185_v30  ;;  %v721_v32 = vpop.f32.mrb[1].mxu0  ;;  %v808_v30 = vld [vmem:[%s1029_s9 + $0x38] sm:$0xff]  }
 0x293   :  { %v188_v33 = vpop.f32.mrb[2].mxu0 }
 0x294   :  { %v722_v34 = vpop.f32.mrb[3].mxu0  ;;  %740 = vmatmul.mubr.bf16.vlgmr.msra.gmra.mrb[8].mxu1 %v207_v31 }
 0x295   :  { %747 = vmatprep.mubr.msk.bf16.mxu1 %vm816_vm1, %v815_v0  ;;  %744 = vmatpush3.bf16.msra.mxu1 %v799_v39 }
 0x296   :  { %745 = vmatprep.subr.bf16.mxu1 %v815_v0 }
 0x299   :  { %746 = vmatpush3.bf16.msra.mxu1 %v800_v48 }
 0x367   :  { %v297_v36 = vpop.f32.mrb[8].mxu1 }
 0x368   :  { %v298_v37 = vadd.f32 %v649_v35, %v297_v36  ;;  %v741_v38 = vpop.f32.mrb[9].mxu1  ;;  %v664_v36 = vld [vmem:[%s1031_s10] ss:$0 sm:$0xff] }
 0x369   :  { %v300_v40 = vpop.f32.mrb[10].mxu1 }
 0x36a   :  { %v304_v41 = vand.u32 2147483647, %v298_v37  ;;  %v742_v42 = vpop.f32.mrb[11].mxu1  ;;  %v611_v43 = vmul.f32 %v298_v37, %v298_v37  ;;  %v303_v50 = vmax.f32 %v298_v37, 0.0 }
 0x36c   :  { %v305_v44 = vsub.f32 0.0, %v304_v41  ;;  %613 = vrot.lane.b32.xlu1 %v611_v43, %s817_s20 }
 0x36e   :  { %v306_v45 = vmul.f32 1.442695, %v305_v44 }
 0x370   :  { %809 = vpow2.f32 %v306_v45 }
 0x37a   :  { %v810_v46 = vpop.eup %809 }
 0x37b   :  { %v308_v47 = vadd.f32 1.0, %v810_v46 }
 0x37d   :  { %811 = vlog2.f32 %v308_v47 }
 0x387   :  { %v812_v49 = vpop.eup %811 }
 0x388   :  { %v310_v51 = vmul.f32 0.6931472, %v812_v49 }
 0x38a   :  { %v311_v52 = vadd.f32 %v310_v51, %v303_v50 }
 0x38c   :  { %v312_v54 = vadd.f32 1e-06, %v311_v52 }
 0x38e   :  { %v317_v55 = vmul.f32 %v315_v53, %v312_v54  ;;  %813 = vlog2.f32 %v312_v54  ;;  %v610_v57 = vmul.f32 %v312_v54, %v312_v54 }
 0x390   :  { %319 = vrot.lane.b32.xlu0 %v317_v55, %s818_s22 }
 0x398   :  { %v814_v56 = vpop.eup %813 }
 0x399   :  { %v608_v59 = vmul.f32 0.6931472, %v814_v56 }
 0x39b   :  { %v609_v62 = vsub.f32 0.0, %v608_v59 }
 0x3de   :  { %v614_v58 = vpop.permute.xlu1 %613 }
 0x3df   :  { %v616_v60 = vadd.f32 %v614_v58, %v610_v57 }
 0x3e1   :  { %v673_v61 = vadd.f32 -1.0, %v616_v60  ;;  %v634_v60 = vlaneseq }
 0x3e3   :  { %v618_v63 = vmul.f32 0.5, %v673_v61  ;;  %v635_v61 = vshrl.u32 %v634_v60, 7 }
 0x3e5   :  { %v619_v1 = vadd.f32 %v618_v63, %v609_v62  ;;  %vm636_vm4 = vcmp.lt.s32.totalorder %v635_v61, 4 }
 0x3e7   :  { %621 = vrot.lane.b32.xlu1 %v619_v1, %s818_s22 }
 0x402   :  { %v320_v3 = vpop.permute.xlu0 %319 }
 0x403   :  { %v322_v4 = vadd.f32 %v320_v3, %v298_v37 }
 0x405   :  { %v327_v5 = vpack.c.bf16 %v322_v4, %v322_v4 }
 0x407   :  { %748 = vmatmul.mubr.msk.bf16.vlgmr.msra.gmra.mrb[12].mxu1 %vm340_vm3, %v327_v5 }
 0x459   :  { %v622_v6 = vpop.permute.xlu1 %621 }
 0x45a   :  { %v624_v7 = vsel %vm340_vm3, %v622_v6, 0.0 }
 0x45b   :  { %625 = vadd.xlane.f32.xlu1 %v624_v7 }
 0x4da   :  { %v378_v8 = vpop.f32.mrb[12].mxu1 }
 0x4db   :  { %v384_v9 = vpack.c.bf16 %v378_v8, %v378_v8  ;;  %v749_v10 = vpop.f32.mrb[13].mxu1 }
 0x4dc   :  { %v381_v12 = vpop.f32.mrb[14].mxu1 }
 0x4dd   :  { %v393_v13 = vsel %vm48_vm0, %v384_v9, 0  ;;  %v750_v14 = vpop.f32.mrb[15].mxu1 }
 0x4de   :  { %752 = vmatpush3.bf16.msra.mxu0 %v393_v13 }
 0x4df   :  { %757 = vmatprep.subr.bf16.mxu0 %v815_v0 }
 0x4e1   :  { %754 = vmatmul.mubr.msk.bf16.vlgmr.msra.gmra.mrb[4].mxu0 %vm44_vm2, %v904_v11 }
 0x4e2   :  { %759 = vmatprep.mubr.msk.bf16.mxu0 %vm816_vm1, %v815_v0 }
 0x4e8   :  { %v626_v47 = vpop.xlane.xlu1 %625 }
 0x4e9   :  { %v627_v48 = vrot.slane %v626_v47, 4 }
 0x4eb   :  { %v628_v49 = vadd.f32 %v627_v48, %v626_v47 }
 0x4ed   :  { %v629_v50 = vrot.slane %v628_v49, 2 }
 0x4ef   :  { %v630_v54 = vadd.f32 %v629_v50, %v628_v49 }
 0x4f1   :  { %v631_v57 = vrot.slane %v630_v54, 1 }
 0x4f3   :  { %v632_v59 = vadd.f32 %v631_v57, %v630_v54 }
 0x5b4   :  { %v429_v16 = vpop.f32.mrb[4].mxu0 }
 0x5b5   :  { %v430_v17 = vadd.f32 %v661_v15, %v429_v16  ;;  %v755_v18 = vpop.f32.mrb[5].mxu0 }
 0x5b6   :  { %v432_v19 = vpop.f32.mrb[6].mxu0 }
 0x5b7   :  { %v435_v20 = vmax.f32 %v430_v17, 0.0  ;;  %v756_v21 = vpop.f32.mrb[7].mxu0 }
 0x5b9   :  { %v436_v22 = vpack.c.bf16 %v435_v20, %v435_v20 }
 0x5bb   :  { %v438_v23 = vsel %vm48_vm0, %v436_v22, 0 }
 0x5bc   :  { %758 = vmatpush3.bf16.msra.mxu0 %v438_v23 }
 0x5bd   :  { %763 = vmatprep.subr.bf16.mxu0 %v815_v0 }
 0x5bf   :  { %760 = vmatmul.mubr.msk.bf16.vlgmr.msra.gmra.mrb[8].mxu0 %vm44_vm2, %v904_v11  ;;  %v804_v11 = vld [vmem:[%s1029_s9 + $0x18] sm:$0xff]  }
 0x5c0   :  { %764 = vmatpush3.bf16.msra.mxu0 %v801_v24  ;;  %779 = vmatprep.mubr.msk.bf16.mxu0 %vm816_vm1, %v815_v0 }
 0x5c1   :  { %765 = vmatprep.subr.bf16.mxu0 %v815_v0 }
 0x5c4   :  { %766 = vmatpush3.bf16.msra.mxu0 %v802_v25 }
 0x5c5   :  { %767 = vmatprep.subr.bf16.mxu0 %v815_v0 }
 0x5c8   :  { %768 = vmatpush3.bf16.msra.mxu0 %v803_v26 }
 0x5c9   :  { %769 = vmatprep.subr.bf16.mxu0 %v815_v0 }
 0x5cc   :  { %770 = vmatpush3.bf16.msra.mxu0 %v804_v11 }
 0x5cd   :  { %771 = vmatprep.subr.bf16.mxu0 %v815_v0 }
 0x5d0   :  { %772 = vmatpush3.bf16.msra.mxu0 %v805_v27 }
 0x5d1   :  { %773 = vmatprep.subr.bf16.mxu0 %v815_v0 }
 0x5d4   :  { %774 = vmatpush3.bf16.msra.mxu0 %v806_v28 }
 0x5d5   :  { %775 = vmatprep.subr.bf16.mxu0 %v815_v0 }
 0x5d8   :  { %776 = vmatpush3.bf16.msra.mxu0 %v807_v29 }
 0x5d9   :  { %777 = vmatprep.subr.bf16.mxu0 %v815_v0 }
 0x5dc   :  { %778 = vmatpush3.bf16.msra.mxu0 %v808_v30 }
 0x692   :  { %v474_v31 = vpop.f32.mrb[8].mxu0 }
 0x693   :  { %v496_v32 = vpack.c.bf16 %v474_v31, %v474_v31  ;;  %v761_v33 = vpop.f32.mrb[9].mxu0 }
 0x694   :  { %v477_v34 = vpop.f32.mrb[10].mxu0 }
 0x695   :  { %780 = vmatmul.mubr.bf16.vlgmr.msra.gmra.mrb[12].mxu0 %v496_v32  ;;  %v762_v35 = vpop.f32.mrb[11].mxu0 }
 0x768   :  { %v586_v37 = vpop.f32.mrb[12].mxu0 }
 0x769   :  { %v587_v38 = vadd.f32 %v664_v36, %v586_v37  ;;  %v781_v39 = vpop.f32.mrb[13].mxu0 }
 0x76a   :  { %v589_v40 = vpop.f32.mrb[14].mxu0 }
 0x76b   :  { %v592_v0 = vsub.f32 %v888_v2, %v587_v38  ;;  %v782_v41 = vpop.f32.mrb[15].mxu0 }
 0x76d   :  { %v593_v42 = vmul.f32 20.0, %v592_v0 }
 0x76f   :  { %v594_v43 = vmul.f32 %v593_v42, %v593_v42 }
 0x771   :  { %v595_v44 = vmul.f32 -0.5, %v594_v43 }
 0x773   :  { %v596_v45 = vadd.f32 2.0767937, %v595_v44 }
 0x775   :  { %v597_v46 = vsel %vm44_vm2, %v596_v45, 0.0 }
 0x776   :  { %598 = vadd.xlane.f32.xlu0 %v597_v46 }
 0x803   :  { %v599_v51 = vpop.xlane.xlu0 %598 }
 0x804   :  { %v600_v52 = vrot.slane %v599_v51, 4 }
 0x806   :  { %v601_v53 = vadd.f32 %v600_v52, %v599_v51 }
 0x808   :  { %v602_v55 = vrot.slane %v601_v53, 2 }
 0x80a   :  { %v603_v56 = vadd.f32 %v602_v55, %v601_v53 }
 0x80c   :  { %v604_v2 = vrot.slane %v603_v56, 1 }
 0x80e   :  { %v605_v58 = vadd.f32 %v604_v2, %v603_v56 }
 0x810   :  { %783 = vpush %v605_v58 }
 0x811   :  { %785 = vpush %v632_v59 }
 0x841   :  { %s784_s9 = spop %783 }
 0x842   :  { %v637_v62 = vstv %s784_s9  ;;  %s786_s10 = spop %785 }
 0x843   :  { %v638_v63 = vstv %s786_s10 }
 0x844   :  { %v639_v1 = vsel %vm636_vm4, %v637_v62, %v638_v63 }
 0x845   :  { %640 = vst [vmem:[%s1032_s11] sm:$0xff] %v639_v1 }

</bundles_post_ra>
